<compile_context>
chip_gen: v6e
topology: v6e:2x2x1
jax: 0.10.0
libtpu: 0.0.40
codegen_flags: <defaults>
</compile_context>

<pallas_src>
import functools

import jax
import jax.numpy as jnp
from jax.experimental import pallas as pl
from jax.experimental.pallas import tpu as pltpu


def _round_up(n, m):
    return ((n + m - 1) // m) * m


def _pick_batch_tile(batch, batch_tile):
    """Static (trace-time) batch-tile selection.

    Small batches: one tile, rounded up to 16 rows (bf16-native sublane pack).
    Large batches: ~batch_tile rows per step, but an even tile count so both
    v7x TensorCores get equal work under dimension_semantics=("parallel",).
    """
    if batch <= batch_tile:
        return _round_up(batch, 16)
    n_tiles = pl.cdiv(batch, batch_tile)
    if n_tiles % 2 == 1:
        n_tiles += 1
    return _round_up(pl.cdiv(batch, n_tiles), 16)


def mlp_kernel(x_ref, w1_ref, b1_ref, w2_ref, b2_ref, w3_ref, b3_ref,
               w4_ref, b4_ref, o_ref):
    # bf16 operands feed the MXU with f32 accumulation (preferred_element_type);
    # bias-add / ReLU run in f32 on the VPU, then recast to bf16 for the next
    # MXU pass. The x cast rides free VPU slack (MXU push slot is the binder).
    h = jnp.dot(x_ref[...].astype(jnp.bfloat16), w1_ref[...],
                preferred_element_type=jnp.float32)
    h = jnp.maximum(h + b1_ref[...], 0.0).astype(jnp.bfloat16)
    h = jnp.dot(h, w2_ref[...], preferred_element_type=jnp.float32)
    h = jnp.maximum(h + b2_ref[...], 0.0).astype(jnp.bfloat16)
    h = jnp.dot(h, w3_ref[...], preferred_element_type=jnp.float32)
    h = jnp.maximum(h + b3_ref[...], 0.0).astype(jnp.bfloat16)
    o_ref[...] = (jnp.dot(h, w4_ref[...], preferred_element_type=jnp.float32)
                  + b4_ref[...])


@functools.partial(jax.jit, static_argnames=("batch_tile",))
def mlp_forward(x, kernel_params, batch_tile=512):
    """x: (batch, input_dim) float32.

    kernel_params: output of prepare_params() — weights stored transposed
    vs PyTorch as (in_features, out_features) in bf16, biases (1, out) in f32.
    """
    w1, b1, w2, b2, w3, b3, w4, b4 = kernel_params
    B, D = x.shape
    H = w1.shape[1]
    O = w4.shape[1]

    tile = _pick_batch_tile(B, batch_tile)
    grid = (pl.cdiv(B, tile),)  # ragged last tile: Pallas masks OOB rows.

    # Constant index_map -> one DMA per weight/bias; VMEM-resident across tiles.
    full = lambda shp: pl.BlockSpec(shp, lambda i: (0, 0))

    flops = 2 * B * (D * H + H * H + H * H + H * O)
    bytes_accessed = (B * D * 4                          # x (f32 in)
                      + (D * H + 2 * H * H + H * O) * 2  # bf16 weights
                      + (3 * H + O) * 4                  # f32 biases
                      + B * O * 4)                       # f32 out

    return pl.pallas_call(
        mlp_kernel,
        out_shape=jax.ShapeDtypeStruct((B, O), jnp.float32),
        grid=grid,
        in_specs=[
            pl.BlockSpec((tile, D), lambda i: (i, 0)),   # x: tiled over batch
            full(w1.shape), full(b1.shape),
            full(w2.shape), full(b2.shape),
            full(w3.shape), full(b3.shape),
            full(w4.shape), full(b4.shape),
        ],
        # Last dim == output_dim (full array dim): legal, and avoids 32x write
        # amplification that 128-lane padding would cause for small output_dim.
        out_specs=pl.BlockSpec((tile, O), lambda i: (i, 0)),
        compiler_params=pltpu.CompilerParams(
            dimension_semantics=("parallel",)),
        cost_estimate=pl.CostEstimate(flops=flops,
                                      bytes_accessed=bytes_accessed,
                                      transcendentals=0),
    )(x, w1, b1, w2, b2, w3, b3, w4, b4)


def init_mlp_params(key, input_dim, output_dim, hidden_size=256):
    """Mimics PyTorch nn.Linear default init: U(-1/sqrt(fan_in), 1/sqrt(fan_in)).
    Weights stored transposed as (in_features, out_features); biases as (1, out)."""
    dims = [(input_dim, hidden_size),
            (hidden_size, hidden_size),
            (hidden_size, hidden_size),
            (hidden_size, output_dim)]
    params = []
    for fan_in, fan_out in dims:
        key, kw, kb = jax.random.split(key, 3)
        bound = 1.0 / jnp.sqrt(jnp.float32(fan_in))
        w = jax.random.uniform(kw, (fan_in, fan_out), jnp.float32, -bound, bound)
        b = jax.random.uniform(kb, (1, fan_out), jnp.float32, -bound, bound)
        params += [w, b]
    return tuple(params)


def prepare_params(params):
    """One-time conversion for the kernel: weights -> bf16, biases stay f32."""
    w1, b1, w2, b2, w3, b3, w4, b4 = params
    bf = jnp.bfloat16
    return (w1.astype(bf), b1, w2.astype(bf), b2,
            w3.astype(bf), b3, w4.astype(bf), b4)


def mlp_forward_ref_f32(x, params):
    """Pure-f32 reference (exact PyTorch-module math)."""
    w1, b1, w2, b2, w3, b3, w4, b4 = params
    h = jnp.maximum(x @ w1 + b1, 0.0)
    h = jnp.maximum(h @ w2 + b2, 0.0)
    h = jnp.maximum(h @ w3 + b3, 0.0)
    return h @ w4 + b4


def mlp_forward_ref_bf16(x, params):
    """Reference mirroring the kernel numerics: bf16 MXU inputs, f32 accumulate."""
    w1, b1, w2, b2, w3, b3, w4, b4 = params
    bf = jnp.bfloat16
    h = jnp.dot(x.astype(bf), w1.astype(bf), preferred_element_type=jnp.float32)
    h = jnp.maximum(h + b1, 0.0).astype(bf)
    h = jnp.dot(h, w2.astype(bf), preferred_element_type=jnp.float32)
    h = jnp.maximum(h + b2, 0.0).astype(bf)
    h = jnp.dot(h, w3.astype(bf), preferred_element_type=jnp.float32)
    h = jnp.maximum(h + b3, 0.0).astype(bf)
    return jnp.dot(h, w4.astype(bf), preferred_element_type=jnp.float32) + b4


if __name__ == "__main__":
    key = jax.random.PRNGKey(0)
    k_param, k_x, k_x2, k_x3 = jax.random.split(key, 4)

    batch, input_dim, output_dim, hidden = 2, 16, 4, 256
    params = init_mlp_params(k_param, input_dim, output_dim, hidden)
    kparams = prepare_params(params)   # one-time bf16 weight conversion

    # Small case (matches the module-spec shapes): single 16-row tile.
    x = jax.random.normal(k_x, (batch, input_dim), jnp.float32)
    y = mlp_forward(x, kparams)
    jax.block_until_ready(y)
    assert y.shape == (batch, output_dim)
    assert jnp.allclose(y, mlp_forward_ref_bf16(x, params), atol=1e-2, rtol=1e-2)
    # Sanity vs exact f32 math (bf16 matmul inputs cost ~1e-2 relative).
    assert jnp.allclose(y, mlp_forward_ref_f32(x, params), atol=5e-2, rtol=5e-2)

    # Medium batch: single ragged tile (304 rows covering 300), no pad/slice ops.
    x2 = jax.random.normal(k_x2, (300, input_dim), jnp.float32)
    y2 = mlp_forward(x2, kparams)
    jax.block_until_ready(y2)
    assert y2.shape == (300, output_dim)
    assert jnp.allclose(y2, mlp_forward_ref_bf16(x2, params), atol=1e-2, rtol=1e-2)

    # Larger batch: exercises the multi-step (even-length) parallel grid with a
    # masked ragged final block.
    x3 = jax.random.normal(k_x3, (1100, input_dim), jnp.float32)
    y3 = mlp_forward(x3, kparams)
    jax.block_until_ready(y3)
    assert y3.shape == (1100, output_dim)
    assert jnp.allclose(y3, mlp_forward_ref_bf16(x3, params), atol=1e-2, rtol=1e-2)

    print("KERNEL_OK")
</pallas_src>

<mosaic_0001>
module attributes {stable_mosaic.version = 11 : i64} {
  func.func @mlp_kernel(%arg0: i32, %arg1: memref<16x16xf32, #tpu.memory_space<vmem>>, %arg2: memref<16x256xbf16, #tpu.memory_space<vmem>>, %arg3: memref<1x256xf32, #tpu.memory_space<vmem>>, %arg4: memref<256x256xbf16, #tpu.memory_space<vmem>>, %arg5: memref<1x256xf32, #tpu.memory_space<vmem>>, %arg6: memref<256x256xbf16, #tpu.memory_space<vmem>>, %arg7: memref<1x256xf32, #tpu.memory_space<vmem>>, %arg8: memref<256x4xbf16, #tpu.memory_space<vmem>>, %arg9: memref<1x4xf32, #tpu.memory_space<vmem>>, %arg10: memref<16x4xf32, #tpu.memory_space<vmem>>) attributes {dimension_semantics = [#tpu.dimension_semantics<parallel>], iteration_bounds = array<i64: 1>, scalar_prefetch = 0 : i64, scratch_operands = 0 : i64, tpu.core_type = #tpu.core_type<tc>, window_params = [{transform_indices = @transform_0, window_bounds = array<i64: 16, 16>}, {pipeline_mode = #tpu.pipeline_mode<synchronous>, transform_indices = @transform_1, window_bounds = array<i64: 16, 256>}, {pipeline_mode = #tpu.pipeline_mode<synchronous>, transform_indices = @transform_2, window_bounds = array<i64: 1, 256>}, {pipeline_mode = #tpu.pipeline_mode<synchronous>, transform_indices = @transform_3, window_bounds = array<i64: 256, 256>}, {pipeline_mode = #tpu.pipeline_mode<synchronous>, transform_indices = @transform_4, window_bounds = array<i64: 1, 256>}, {pipeline_mode = #tpu.pipeline_mode<synchronous>, transform_indices = @transform_5, window_bounds = array<i64: 256, 256>}, {pipeline_mode = #tpu.pipeline_mode<synchronous>, transform_indices = @transform_6, window_bounds = array<i64: 1, 256>}, {pipeline_mode = #tpu.pipeline_mode<synchronous>, transform_indices = @transform_7, window_bounds = array<i64: 256, 4>}, {pipeline_mode = #tpu.pipeline_mode<synchronous>, transform_indices = @transform_8, window_bounds = array<i64: 1, 4>}, {transform_indices = @transform_9, window_bounds = array<i64: 16, 4>}]} {
    %c0 = arith.constant 0 : index
    %c0_0 = arith.constant 0 : index
    %0 = vector.load %arg1[%c0, %c0_0] : memref<16x16xf32, #tpu.memory_space<vmem>>, vector<16x16xf32>
    %1 = arith.truncf %0 : vector<16x16xf32> to vector<16x16xbf16>
    %c0_1 = arith.constant 0 : index
    %c0_2 = arith.constant 0 : index
    %2 = vector.load %arg2[%c0_1, %c0_2] : memref<16x256xbf16, #tpu.memory_space<vmem>>, vector<16x256xbf16>
    %cst = arith.constant dense<0.000000e+00> : vector<16x256xf32>
    %3 = tpu.matmul %1, %2, %cst {dimension_numbers = #tpu.dot_dimension_numbers<[1], [0], [0], [1], [0, 0, 1, 1], [], []>} : vector<16x16xbf16>, vector<16x256xbf16>, vector<16x256xf32> -> vector<16x256xf32>
    %c0_3 = arith.constant 0 : index
    %c0_4 = arith.constant 0 : index
    %4 = vector.load %arg3[%c0_3, %c0_4] : memref<1x256xf32, #tpu.memory_space<vmem>>, vector<1x256xf32>
    %5 = vector.broadcast %4 : vector<1x256xf32> to vector<16x256xf32>
    %6 = arith.addf %3, %5 : vector<16x256xf32>
    %cst_5 = arith.constant 0.000000e+00 : f32
    %7 = vector.broadcast %cst_5 : f32 to vector<16x256xf32>
    %8 = arith.maximumf %6, %7 : vector<16x256xf32>
    %9 = arith.truncf %8 : vector<16x256xf32> to vector<16x256xbf16>
    %c0_6 = arith.constant 0 : index
    %c0_7 = arith.constant 0 : index
    %10 = vector.load %arg4[%c0_6, %c0_7] : memref<256x256xbf16, #tpu.memory_space<vmem>>, vector<256x256xbf16>
    %cst_8 = arith.constant dense<0.000000e+00> : vector<16x256xf32>
    %11 = tpu.matmul %9, %10, %cst_8 {dimension_numbers = #tpu.dot_dimension_numbers<[1], [0], [0], [1], [0, 0, 1, 1], [], []>} : vector<16x256xbf16>, vector<256x256xbf16>, vector<16x256xf32> -> vector<16x256xf32>
    %c0_9 = arith.constant 0 : index
    %c0_10 = arith.constant 0 : index
    %12 = vector.load %arg5[%c0_9, %c0_10] : memref<1x256xf32, #tpu.memory_space<vmem>>, vector<1x256xf32>
    %13 = vector.broadcast %12 : vector<1x256xf32> to vector<16x256xf32>
    %14 = arith.addf %11, %13 : vector<16x256xf32>
    %cst_11 = arith.constant 0.000000e+00 : f32
    %15 = vector.broadcast %cst_11 : f32 to vector<16x256xf32>
    %16 = arith.maximumf %14, %15 : vector<16x256xf32>
    %17 = arith.truncf %16 : vector<16x256xf32> to vector<16x256xbf16>
    %c0_12 = arith.constant 0 : index
    %c0_13 = arith.constant 0 : index
    %18 = vector.load %arg6[%c0_12, %c0_13] : memref<256x256xbf16, #tpu.memory_space<vmem>>, vector<256x256xbf16>
    %cst_14 = arith.constant dense<0.000000e+00> : vector<16x256xf32>
    %19 = tpu.matmul %17, %18, %cst_14 {dimension_numbers = #tpu.dot_dimension_numbers<[1], [0], [0], [1], [0, 0, 1, 1], [], []>} : vector<16x256xbf16>, vector<256x256xbf16>, vector<16x256xf32> -> vector<16x256xf32>
    %c0_15 = arith.constant 0 : index
    %c0_16 = arith.constant 0 : index
    %20 = vector.load %arg7[%c0_15, %c0_16] : memref<1x256xf32, #tpu.memory_space<vmem>>, vector<1x256xf32>
    %21 = vector.broadcast %20 : vector<1x256xf32> to vector<16x256xf32>
    %22 = arith.addf %19, %21 : vector<16x256xf32>
    %cst_17 = arith.constant 0.000000e+00 : f32
    %23 = vector.broadcast %cst_17 : f32 to vector<16x256xf32>
    %24 = arith.maximumf %22, %23 : vector<16x256xf32>
    %25 = arith.truncf %24 : vector<16x256xf32> to vector<16x256xbf16>
    %c0_18 = arith.constant 0 : index
    %c0_19 = arith.constant 0 : index
    %26 = vector.load %arg8[%c0_18, %c0_19] : memref<256x4xbf16, #tpu.memory_space<vmem>>, vector<256x4xbf16>
    %cst_20 = arith.constant dense<0.000000e+00> : vector<16x4xf32>
    %27 = tpu.matmul %25, %26, %cst_20 {dimension_numbers = #tpu.dot_dimension_numbers<[1], [0], [0], [1], [0, 0, 1, 1], [], []>} : vector<16x256xbf16>, vector<256x4xbf16>, vector<16x4xf32> -> vector<16x4xf32>
    %c0_21 = arith.constant 0 : index
    %c0_22 = arith.constant 0 : index
    %28 = vector.load %arg9[%c0_21, %c0_22] : memref<1x4xf32, #tpu.memory_space<vmem>>, vector<1x4xf32>
    %29 = vector.broadcast %28 : vector<1x4xf32> to vector<16x4xf32>
    %30 = arith.addf %27, %29 : vector<16x4xf32>
    %c0_23 = arith.constant 0 : index
    %c0_24 = arith.constant 0 : index
    %31 = vector.load %arg10[%c0_23, %c0_24] : memref<16x4xf32, #tpu.memory_space<vmem>>, vector<16x4xf32>
    tpu.vector_store %arg10[%c0_23, %c0_24], %30 {strides = array<i32>} : memref<16x4xf32, #tpu.memory_space<vmem>>, vector<16x4xf32>,
    return
  }
  func.func @transform_0(%arg0: i32) -> (i32, i32) {
    %c0_i32 = arith.constant 0 : i32
    %c0_i32_0 = arith.constant 0 : i32
    return %arg0, %c0_i32 : i32, i32
  }
  func.func @transform_1(%arg0: i32) -> (i32, i32) {
    %c0_i32 = arith.constant 0 : i32
    %c0_i32_0 = arith.constant 0 : i32
    %c0_i32_1 = arith.constant 0 : i32
    return %c0_i32, %c0_i32_0 : i32, i32
  }
  func.func @transform_2(%arg0: i32) -> (i32, i32) {
    %c0_i32 = arith.constant 0 : i32
    %c0_i32_0 = arith.constant 0 : i32
    %c0_i32_1 = arith.constant 0 : i32
    return %c0_i32, %c0_i32_0 : i32, i32
  }
  func.func @transform_3(%arg0: i32) -> (i32, i32) {
    %c0_i32 = arith.constant 0 : i32
    %c0_i32_0 = arith.constant 0 : i32
    %c0_i32_1 = arith.constant 0 : i32
    return %c0_i32, %c0_i32_0 : i32, i32
  }
  func.func @transform_4(%arg0: i32) -> (i32, i32) {
    %c0_i32 = arith.constant 0 : i32
    %c0_i32_0 = arith.constant 0 : i32
    %c0_i32_1 = arith.constant 0 : i32
    return %c0_i32, %c0_i32_0 : i32, i32
  }
  func.func @transform_5(%arg0: i32) -> (i32, i32) {
    %c0_i32 = arith.constant 0 : i32
    %c0_i32_0 = arith.constant 0 : i32
    %c0_i32_1 = arith.constant 0 : i32
    return %c0_i32, %c0_i32_0 : i32, i32
  }
  func.func @transform_6(%arg0: i32) -> (i32, i32) {
    %c0_i32 = arith.constant 0 : i32
    %c0_i32_0 = arith.constant 0 : i32
    %c0_i32_1 = arith.constant 0 : i32
    return %c0_i32, %c0_i32_0 : i32, i32
  }
  func.func @transform_7(%arg0: i32) -> (i32, i32) {
    %c0_i32 = arith.constant 0 : i32
    %c0_i32_0 = arith.constant 0 : i32
    %c0_i32_1 = arith.constant 0 : i32
    return %c0_i32, %c0_i32_0 : i32, i32
  }
  func.func @transform_8(%arg0: i32) -> (i32, i32) {
    %c0_i32 = arith.constant 0 : i32
    %c0_i32_0 = arith.constant 0 : i32
    %c0_i32_1 = arith.constant 0 : i32
    return %c0_i32, %c0_i32_0 : i32, i32
  }
  func.func @transform_9(%arg0: i32) -> (i32, i32) {
    %c0_i32 = arith.constant 0 : i32
    %c0_i32_0 = arith.constant 0 : i32
    return %arg0, %c0_i32 : i32, i32
  }
}

</mosaic_0001>

<bundles_post_ra>
// kernel: mlp_forward.1
= control target key start
LH: loop header
LB: loop body
LE: loop exit
PB: predicated region body
PF: predicated region fallthrough
CT: control target
= control target key end

     0   :  { %14 = vsyncpa [#allocation3], 0  ;;  %s1289_s0 = inlined_call_operand.vmem [shape: f32[2,16], index: 0, kind: input, shape index: {}]   ;;  %s1290_s1 = inlined_call_operand.vmem [shape: bf16[16,256], index: 1, kind: input, shape index: {}]   ;;  %s1291_s2 = inlined_call_operand.vmem [shape: f32[1,256], index: 2, kind: input, shape index: {}]   ;;  %s1292_s3 = inlined_call_operand.hbm [shape: bf16[256,256], index: 3, kind: input, shape index: {}]   ;;  %s1293_s4 = inlined_call_operand.vmem [shape: f32[1,256], index: 4, kind: input, shape index: {}]   ;;  %s1294_s5 = inlined_call_operand.hbm [shape: bf16[256,256], index: 5, kind: input, shape index: {}]   ;;  %s1295_s6 = inlined_call_operand.vmem [shape: f32[1,256], index: 6, kind: input, shape index: {}]   ;;  %s1296_s7 = inlined_call_operand.vmem [shape: bf16[256,4], index: 7, kind: input, shape index: {}]   ;;  %s1297_s8 = inlined_call_operand.vmem [shape: f32[1,4], index: 8, kind: input, shape index: {}]   ;;  %s1298_s9 = inlined_call_operand.hbm [shape: f32[2,4], index: 9, kind: output, shape index: {}]  }
   0x1   :  { %15 = vsyncpa [#allocation6], 0 }
   0x2   :  { %16 = vsyncpa [#allocation4], 0  ;;  %s1140_s30 = smov [#allocation2]  }
   0x3   :  { %s28_s10 = sshll.u32 %s1140_s30, 4  ;;  %s29_s10 = int_to_ptr.vmem [resolvable:$true] %s28_s10 }
   0x4   :  { %s1082_s11 = scalar_lea.vmem %s29_s10, 4096  ;;  %p1087_p1 = scmp.lt.s32.totalorder %s29_s10, %s29_s10 }
   0x5   :  { %p1083_p0 = scmp.ne.s32.totalorder %s29_s10, %s1082_s11  ;;  %p1088_p2 = scmp.lt.s32.totalorder %s1082_s11, %s1082_s11 }
   0x7   :  { %p1089_p3 = por %p1088_p2, %p1087_p1 }
   0x9   :  { %p1090_p4 = pnand %p1089_p3, %p1083_p0 }
   0xb   :  { %1093 = shalt.err (!%p1090_p4)
}
   0xc   :  { %s1141_s12 = smov 128   ;;  %s1142_s13 = smov 8  }
   0xd   :  { %34 = dma.hbm_to_vmem [thread:$0]  %s1292_s3, 4096, %s29_s10, [#allocation3], %s1141_s12, %s1141_s12, %s1142_s13  }
   0xe   :  { %s1143_s16 = smov [#allocation5]  }
   0xf   :  { %s42_s17 = sshll.u32 %s1143_s16, 4  ;;  %s43_s17 = int_to_ptr.vmem [resolvable:$true] %s42_s17 }
  0x10   :  { %s1102_s18 = scalar_lea.vmem %s43_s17, 4096  ;;  %p1107_p6 = scmp.lt.s32.totalorder %s43_s17, %s43_s17 }
  0x11   :  { %p1103_p5 = scmp.ne.s32.totalorder %s43_s17, %s1102_s18  ;;  %p1108_p7 = scmp.lt.s32.totalorder %s1102_s18, %s1102_s18 }
  0x13   :  { %p1109_p8 = por %p1108_p7, %p1107_p6 }
  0x15   :  { %p1110_p9 = pnand %p1109_p8, %p1103_p5 }
  0x17   :  { %1113 = shalt.err (!%p1110_p9)
}
  0x18   :  { %48 = dma.hbm_to_vmem [thread:$0]  %s1294_s5, 4096, %s43_s17, [#allocation6], %s1141_s12, %s1141_s12, %s1142_s13  }
  0x19   :  { %1134 = dma.done.wait [#allocation3], 4096  }
  0x1a   :  { %1135 = vsyncadd [#allocation3], 4294963200 }
  0x1b   :  { %1136 = dma.done.wait [#allocation6], 4096  }
  0x1c   :  { %1137 = vsyncadd [#allocation6], 4294963200  ;;  %v1144_v0 = vmov 0   ;;  %v959_v1 = vld [vmem:[%s1290_s1 + $0x4] ss:$8 sps:$4 sm:$0xff]   ;;  %vm89_vm0 = vcmask 130048  }
  0x1d   :  { %125 = vmatprep.mubr.bf16.mxu0 %v1144_v0  ;;  %v961_v2 = vld [vmem:[%s1290_s1] ss:$8 sps:$4 sm:$0xff]   ;;  %107 = vmatprep.subr.bf16.mxu0 %v959_v1  ;;  %v962_v6 = vld [vmem:[#allocation2 + $0x74] ss:$8 sps:$4 sm:$0xff]   ;;  %v964_v7 = vld [vmem:[#allocation2 + $0x70] ss:$8 sps:$4 sm:$0xff]   ;;  %v69_v0 = vlaneseq }
  0x1e   :  { %v62_v3 = vld [vmem:[%s1289_s0] sm:$0xff]  ;;  %v63_v4 = vld [vmem:[%s1289_s0 + $0x8] sm:$0xff]  ;;  %108 = vmatpush1.bf16.msra.mxu0 %v961_v2  ;;  %346 = vmatprep.subr.bf16.mxu1 %v962_v6  ;;  %v968_v10 = vld [vmem:[#allocation2 + $0x54] ss:$8 sps:$4 sm:$0xff]   ;;  %vm824_vm1 = vcmask 31744  }
  0x1f   :  { %v64_v5 = vpack.c.bf16 %v63_v4, %v62_v3  ;;  %v965_v8 = vld [vmem:[#allocation2 + $0x64] ss:$8 sps:$4 sm:$0xff]   ;;  %347 = vmatpush1.bf16.msra.mxu1 %v964_v7  ;;  %v967_v9 = vld [vmem:[#allocation2 + $0x60] ss:$8 sps:$4 sm:$0xff]   ;;  %v970_v11 = vld [vmem:[#allocation2 + $0x50] ss:$8 sps:$4 sm:$0xff]  }
  0x20   :  { %348 = vmatprep.subr.bf16.mxu1 %v965_v8  ;;  %v971_v12 = vld [vmem:[#allocation2 + $0x44] ss:$8 sps:$4 sm:$0xff]   ;;  %v973_v13 = vld [vmem:[#allocation2 + $0x40] ss:$8 sps:$4 sm:$0xff]   ;;  %v974_v14 = vld [vmem:[#allocation2 + $0x34] ss:$8 sps:$4 sm:$0xff]  }
  0x21   :  { %847 = vmatmul.mubr.msk.bf16.vlgmr.msra.gmra.mxu0 %vm89_vm0, %v64_v5  ;;  %v976_v15 = vld [vmem:[#allocation2 + $0x30] ss:$8 sps:$4 sm:$0xff]   ;;  %v977_v16 = vld [vmem:[#allocation2 + $0x24] ss:$8 sps:$4 sm:$0xff]   ;;  %v979_v17 = vld [vmem:[#allocation2 + $0x20] ss:$8 sps:$4 sm:$0xff]  }
  0x22   :  { %v980_v18 = vld [vmem:[#allocation2 + $0x14] ss:$8 sps:$4 sm:$0xff]   ;;  %v982_v19 = vld [vmem:[#allocation2 + $0x10] ss:$8 sps:$4 sm:$0xff]   ;;  %v983_v20 = vld [vmem:[#allocation2 + $0x4] ss:$8 sps:$4 sm:$0xff]  }
  0x23   :  { %349 = vmatpush1.bf16.msra.mxu1 %v967_v9  ;;  %v985_v21 = vld [vmem:[#allocation2] ss:$8 sps:$4 sm:$0xff]   ;;  %v986_v22 = vld [vmem:[#allocation2 + $0xf4] ss:$8 sps:$4 sm:$0xff]   ;;  %v988_v23 = vld [vmem:[#allocation2 + $0xf0] ss:$8 sps:$4 sm:$0xff]  }
  0x24   :  { %350 = vmatprep.subr.bf16.mxu1 %v968_v10  ;;  %v989_v24 = vld [vmem:[#allocation2 + $0xe4] ss:$8 sps:$4 sm:$0xff]   ;;  %v991_v25 = vld [vmem:[#allocation2 + $0xe0] ss:$8 sps:$4 sm:$0xff]   ;;  %v992_v26 = vld [vmem:[#allocation2 + $0xd4] ss:$8 sps:$4 sm:$0xff]  }
  0x25   :  { %v994_v27 = vld [vmem:[#allocation2 + $0xd0] ss:$8 sps:$4 sm:$0xff]   ;;  %v995_v28 = vld [vmem:[#allocation2 + $0xc4] ss:$8 sps:$4 sm:$0xff]   ;;  %v997_v29 = vld [vmem:[#allocation2 + $0xc0] ss:$8 sps:$4 sm:$0xff]  }
  0x26   :  { %v998_v30 = vld [vmem:[#allocation2 + $0xb4] ss:$8 sps:$4 sm:$0xff]   ;;  %v1000_v31 = vld [vmem:[#allocation2 + $0xb0] ss:$8 sps:$4 sm:$0xff]   ;;  %v1001_v32 = vld [vmem:[#allocation2 + $0xa4] ss:$8 sps:$4 sm:$0xff]  }
  0x27   :  { %351 = vmatpush1.bf16.msra.mxu1 %v970_v11  ;;  %v1003_v33 = vld [vmem:[#allocation2 + $0xa0] ss:$8 sps:$4 sm:$0xff]   ;;  %v1004_v34 = vld [vmem:[#allocation2 + $0x94] ss:$8 sps:$4 sm:$0xff]   ;;  %v1006_v35 = vld [vmem:[#allocation2 + $0x90] ss:$8 sps:$4 sm:$0xff]  }
  0x28   :  { %352 = vmatprep.subr.bf16.mxu1 %v971_v12  ;;  %v1007_v36 = vld [vmem:[#allocation2 + $0x84] ss:$8 sps:$4 sm:$0xff]   ;;  %v1009_v37 = vld [vmem:[#allocation2 + $0x80] ss:$8 sps:$4 sm:$0xff]   ;;  %v1010_v38 = vld [vmem:[#allocation5 + $0x70] ss:$8 sps:$4 sm:$0xff]  }
  0x29   :  { %v1012_v39 = vld [vmem:[#allocation5 + $0x74] ss:$8 sps:$4 sm:$0xff]   ;;  %v1015_v40 = vld [vmem:[#allocation5 + $0x64] ss:$8 sps:$4 sm:$0xff]   ;;  %v1013_v41 = vld [vmem:[#allocation5 + $0x60] ss:$8 sps:$4 sm:$0xff]  }
  0x2a   :  { %599 = vmatprep.subr.bf16.mxu0 %v1012_v39  ;;  %v1018_v42 = vld [vmem:[#allocation5 + $0x54] ss:$8 sps:$4 sm:$0xff]   ;;  %v1016_v43 = vld [vmem:[#allocation5 + $0x50] ss:$8 sps:$4 sm:$0xff]   ;;  %v1021_v44 = vld [vmem:[#allocation5 + $0x44] ss:$8 sps:$4 sm:$0xff]  }
  0x2b   :  { %353 = vmatpush1.bf16.msra.mxu1 %v973_v13  ;;  %600 = vmatpush1.bf16.msra.mxu0 %v1010_v38  ;;  %v1019_v45 = vld [vmem:[#allocation5 + $0x40] ss:$8 sps:$4 sm:$0xff]   ;;  %v1024_v46 = vld [vmem:[#allocation5 + $0x34] ss:$8 sps:$4 sm:$0xff]   ;;  %v1022_v47 = vld [vmem:[#allocation5 + $0x30] ss:$8 sps:$4 sm:$0xff]  }
  0x2c   :  { %354 = vmatprep.subr.bf16.mxu1 %v974_v14  ;;  %601 = vmatprep.subr.bf16.mxu0 %v1015_v40  ;;  %v1027_v48 = vld [vmem:[#allocation5 + $0x24] ss:$8 sps:$4 sm:$0xff]   ;;  %v1025_v49 = vld [vmem:[#allocation5 + $0x20] ss:$8 sps:$4 sm:$0xff]   ;;  %v1030_v50 = vld [vmem:[#allocation5 + $0x14] ss:$8 sps:$4 sm:$0xff]  }
  0x2d   :  { %v1028_v51 = vld [vmem:[#allocation5 + $0x10] ss:$8 sps:$4 sm:$0xff]   ;;  %v1033_v52 = vld [vmem:[#allocation5 + $0x4] ss:$8 sps:$4 sm:$0xff]   ;;  %v1031_v53 = vld [vmem:[#allocation5] ss:$8 sps:$4 sm:$0xff]  }
  0x2e   :  { %v1036_v54 = vld [vmem:[#allocation5 + $0xf4] ss:$8 sps:$4 sm:$0xff]   ;;  %v1034_v55 = vld [vmem:[#allocation5 + $0xf0] ss:$8 sps:$4 sm:$0xff]   ;;  %v1039_v56 = vld [vmem:[#allocation5 + $0xe4] ss:$8 sps:$4 sm:$0xff]  }
  0x2f   :  { %355 = vmatpush1.bf16.msra.mxu1 %v976_v15  ;;  %602 = vmatpush1.bf16.msra.mxu0 %v1013_v41  ;;  %v1037_v57 = vld [vmem:[#allocation5 + $0xe0] ss:$8 sps:$4 sm:$0xff]   ;;  %v1042_v58 = vld [vmem:[#allocation5 + $0xd4] ss:$8 sps:$4 sm:$0xff]   ;;  %v1040_v59 = vld [vmem:[#allocation5 + $0xd0] ss:$8 sps:$4 sm:$0xff]  }
  0x30   :  { %356 = vmatprep.subr.bf16.mxu1 %v977_v16  ;;  %603 = vmatprep.subr.bf16.mxu0 %v1018_v42  ;;  %v1045_v60 = vld [vmem:[#allocation5 + $0xc4] ss:$8 sps:$4 sm:$0xff]   ;;  %v1043_v61 = vld [vmem:[#allocation5 + $0xc0] ss:$8 sps:$4 sm:$0xff]   ;;  %v1048_v62 = vld [vmem:[#allocation5 + $0xb4] ss:$8 sps:$4 sm:$0xff]  }
  0x31   :  { %v1046_v63 = vld [vmem:[#allocation5 + $0xb0] ss:$8 sps:$4 sm:$0xff]   ;;  %v70_v1 = vshrl.u32 %v69_v0, 7  ;;  %v67_v4 = vld [vmem:[%s1291_s2] sm:$0x3] }
  0x33   :  { %357 = vmatpush1.bf16.msra.mxu1 %v979_v17  ;;  %604 = vmatpush1.bf16.msra.mxu0 %v1016_v43  ;;  %v1216_v2 = vsub.s32 1, %v70_v1  ;;  %v1218_v3 = vsub.s32 0, %v70_v1 }
  0x34   :  { %358 = vmatprep.subr.bf16.mxu1 %v980_v18  ;;  %605 = vmatprep.subr.bf16.mxu0 %v1021_v44 }
  0x35   :  { %v76_v6 = vrot.slane %v67_v4, %v1216_v2  ;;  %v72_v7 = vrot.slane %v67_v4, %v1218_v3 }
  0x37   :  { %359 = vmatpush1.bf16.msra.mxu1 %v982_v19  ;;  %606 = vmatpush1.bf16.msra.mxu0 %v1019_v45 }
  0x38   :  { %360 = vmatprep.subr.bf16.mxu1 %v983_v20  ;;  %607 = vmatprep.subr.bf16.mxu0 %v1024_v46 }
  0x3b   :  { %361 = vmatpush1.bf16.msra.mxu1 %v985_v21  ;;  %608 = vmatpush1.bf16.msra.mxu0 %v1022_v47  ;;  %v1051_v21 = vld [vmem:[#allocation5 + $0xa4] ss:$8 sps:$4 sm:$0xff]  }
  0x3c   :  { %362 = vmatprep.subr.bf16.mxu1 %v986_v22  ;;  %609 = vmatprep.subr.bf16.mxu0 %v1027_v48  ;;  %v1049_v22 = vld [vmem:[#allocation5 + $0xa0] ss:$8 sps:$4 sm:$0xff]  }
  0x3f   :  { %363 = vmatpush2.bf16.msra.mxu1 %v988_v23  ;;  %610 = vmatpush1.bf16.msra.mxu0 %v1025_v49  ;;  %v1054_v23 = vld [vmem:[#allocation5 + $0x94] ss:$8 sps:$4 sm:$0xff]  }
  0x40   :  { %364 = vmatprep.subr.bf16.mxu1 %v989_v24  ;;  %611 = vmatprep.subr.bf16.mxu0 %v1030_v50  ;;  %v1052_v24 = vld [vmem:[#allocation5 + $0x90] ss:$8 sps:$4 sm:$0xff]  }
  0x43   :  { %365 = vmatpush2.bf16.msra.mxu1 %v991_v25  ;;  %612 = vmatpush1.bf16.msra.mxu0 %v1028_v51  ;;  %v1057_v25 = vld [vmem:[#allocation5 + $0x84] ss:$8 sps:$4 sm:$0xff]  }
  0x44   :  { %366 = vmatprep.subr.bf16.mxu1 %v992_v26  ;;  %613 = vmatprep.subr.bf16.mxu0 %v1033_v52  ;;  %v1055_v26 = vld [vmem:[#allocation5 + $0x80] ss:$8 sps:$4 sm:$0xff]  }
  0x47   :  { %367 = vmatpush2.bf16.msra.mxu1 %v994_v27  ;;  %614 = vmatpush1.bf16.msra.mxu0 %v1031_v53  ;;  %v1058_v27 = vld [vmem:[%s1296_s7 + $0x78] sm:$0xff]  }
  0x48   :  { %368 = vmatprep.subr.bf16.mxu1 %v995_v28  ;;  %615 = vmatprep.subr.bf16.mxu0 %v1036_v54  ;;  %v1059_v28 = vld [vmem:[%s1296_s7 + $0x38] sm:$0xff]   ;;  %v1068_v54 = vld [vmem:[%s1296_s7 + $0x50] sm:$0xff]  }
  0x4b   :  { %369 = vmatpush2.bf16.msra.mxu1 %v997_v29  ;;  %616 = vmatpush2.bf16.msra.mxu0 %v1034_v55  ;;  %v1060_v29 = vld [vmem:[%s1296_s7 + $0x70] sm:$0xff]  }
  0x4c   :  { %370 = vmatprep.subr.bf16.mxu1 %v998_v30  ;;  %617 = vmatprep.subr.bf16.mxu0 %v1039_v56  ;;  %v1061_v30 = vld [vmem:[%s1296_s7 + $0x30] sm:$0xff]   ;;  %v1070_v56 = vld [vmem:[%s1296_s7 + $0x48] sm:$0xff]  }
  0x4d   :  { %v1069_v55 = vld [vmem:[%s1296_s7 + $0x10] sm:$0xff]  }
  0x4f   :  { %371 = vmatpush2.bf16.msra.mxu1 %v1000_v31  ;;  %618 = vmatpush2.bf16.msra.mxu0 %v1037_v57  ;;  %v1062_v31 = vld [vmem:[%s1296_s7 + $0x68] sm:$0xff]  }
  0x50   :  { %372 = vmatprep.subr.bf16.mxu1 %v1001_v32  ;;  %619 = vmatprep.subr.bf16.mxu0 %v1042_v58  ;;  %v1063_v32 = vld [vmem:[%s1296_s7 + $0x28] sm:$0xff]   ;;  %v1072_v58 = vld [vmem:[%s1296_s7 + $0x40] sm:$0xff]  }
  0x51   :  { %v1071_v57 = vld [vmem:[%s1296_s7 + $0x8] sm:$0xff]  }
  0x53   :  { %373 = vmatpush2.bf16.msra.mxu1 %v1003_v33  ;;  %620 = vmatpush2.bf16.msra.mxu0 %v1040_v59  ;;  %v1064_v33 = vld [vmem:[%s1296_s7 + $0x60] sm:$0xff]  }
  0x54   :  { %374 = vmatprep.subr.bf16.mxu1 %v1004_v34  ;;  %621 = vmatprep.subr.bf16.mxu0 %v1045_v60  ;;  %v1065_v34 = vld [vmem:[%s1296_s7 + $0x20] sm:$0xff]  }
  0x55   :  { %v1073_v59 = vld [vmem:[%s1296_s7] sm:$0xff]  }
  0x56   :  { %v427_v60 = vld [vmem:[%s1295_s6] sm:$0x3] }
  0x57   :  { %375 = vmatpush2.bf16.msra.mxu1 %v1006_v35  ;;  %622 = vmatpush2.bf16.msra.mxu0 %v1043_v61  ;;  %v1066_v35 = vld [vmem:[%s1296_s7 + $0x58] sm:$0xff]  }
  0x58   :  { %376 = vmatprep.subr.bf16.mxu1 %v1007_v36  ;;  %623 = vmatprep.subr.bf16.mxu0 %v1048_v62  ;;  %v1067_v36 = vld [vmem:[%s1296_s7 + $0x18] sm:$0xff]   ;;  %v436_v62 = vrot.slane %v427_v60, %v1216_v2 }
  0x5b   :  { %377 = vmatpush2.bf16.msra.mxu1 %v1009_v37  ;;  %624 = vmatpush2.bf16.msra.mxu0 %v1046_v63  ;;  %v174_v37 = vld [vmem:[%s1293_s4] sm:$0x3]  ;;  %v432_v63 = vrot.slane %v427_v60, %v1218_v3 }
  0x5c   :  { %625 = vmatprep.subr.bf16.mxu0 %v1051_v21  ;;  %929 = vmatprep.subr.bf16.mxu1 %v1058_v27  ;;  %v183_v39 = vrot.slane %v174_v37, %v1216_v2  ;;  %v179_v40 = vrot.slane %v174_v37, %v1218_v3  ;;  %v912_v2 = vld [vmem:[%s1297_s8] ss:$0 sm:$0xff] }
  0x5f   :  { %626 = vmatpush2.bf16.msra.mxu0 %v1049_v22 }
  0x60   :  { %627 = vmatprep.subr.bf16.mxu0 %v1054_v23 }
  0x63   :  { %628 = vmatpush2.bf16.msra.mxu0 %v1052_v24 }
  0x64   :  { %629 = vmatprep.subr.bf16.mxu0 %v1057_v25 }
  0x67   :  { %630 = vmatpush2.bf16.msra.mxu0 %v1055_v26 }
  0xe1   :  { %v127_v5 = vpop.f32.mrf.mxu0 }
  0xe2   :  { %v128_v12 = vadd.f32 %v127_v5, %v72_v7 }
  0xe3   :  { %v129_v8 = vpop.f32.mrf.mxu0 }
  0xe4   :  { %v130_v10 = vadd.f32 %v129_v8, %v76_v6  ;;  %v136_v18 = vmax.f32 %v128_v12, 0.0 }
  0xe5   :  { %v131_v9 = vpop.f32.mrf.mxu0 }
  0xe6   :  { %v132_v11 = vadd.f32 %v131_v9, %v72_v7  ;;  %v137_v16 = vmax.f32 %v130_v10, 0.0 }
  0xe7   :  { %v133_v13 = vpop.f32.mrf.mxu0 }
  0xe8   :  { %v134_v14 = vadd.f32 %v133_v13, %v76_v6  ;;  %v138_v15 = vmax.f32 %v132_v11, 0.0 }
  0xea   :  { %v139_v17 = vmax.f32 %v134_v14, 0.0  ;;  %v140_v20 = vpack.c.bf16 %v138_v15, %v136_v18 }
  0xec   :  { %v141_v19 = vpack.c.bf16 %v139_v17, %v137_v16 }
  0xee   :  { %378 = vmatprep.mubr.bf16.mxu1 %v141_v19 }
  0xef   :  { %379 = vmatmul.mubr.bf16.vlgmr.msra.gmra.mxu1 %v140_v20 }
  0xf0   :  { %930 = vmatpush3.bf16.msra.mxu1 %v1059_v28 }
  0xf1   :  { %931 = vmatprep.subr.bf16.mxu1 %v1060_v29 }
  0xf4   :  { %932 = vmatpush3.bf16.msra.mxu1 %v1061_v30 }
  0xf5   :  { %933 = vmatprep.subr.bf16.mxu1 %v1062_v31 }
  0xf8   :  { %934 = vmatpush3.bf16.msra.mxu1 %v1063_v32 }
  0xf9   :  { %935 = vmatprep.subr.bf16.mxu1 %v1064_v33 }
  0xfc   :  { %936 = vmatpush3.bf16.msra.mxu1 %v1065_v34 }
  0xfd   :  { %937 = vmatprep.subr.bf16.mxu1 %v1066_v35 }
 0x100   :  { %938 = vmatpush3.bf16.msra.mxu1 %v1067_v36 }
 0x101   :  { %939 = vmatprep.subr.bf16.mxu1 %v1068_v54 }
 0x104   :  { %940 = vmatpush3.bf16.msra.mxu1 %v1069_v55 }
 0x105   :  { %941 = vmatprep.subr.bf16.mxu1 %v1070_v56 }
 0x108   :  { %942 = vmatpush3.bf16.msra.mxu1 %v1071_v57 }
 0x109   :  { %943 = vmatprep.subr.bf16.mxu1 %v1072_v58 }
 0x10c   :  { %944 = vmatpush3.bf16.msra.mxu1 %v1073_v59 }
 0x1af   :  { %v380_v38 = vpop.f32.mrf.mxu1 }
 0x1b0   :  { %v381_v45 = vadd.f32 %v380_v38, %v179_v40 }
 0x1b1   :  { %v382_v41 = vpop.f32.mrf.mxu1 }
 0x1b2   :  { %v383_v43 = vadd.f32 %v382_v41, %v183_v39  ;;  %v389_v51 = vmax.f32 %v381_v45, 0.0 }
 0x1b3   :  { %v384_v42 = vpop.f32.mrf.mxu1 }
 0x1b4   :  { %v385_v44 = vadd.f32 %v384_v42, %v179_v40  ;;  %v390_v49 = vmax.f32 %v383_v43, 0.0 }
 0x1b5   :  { %v386_v46 = vpop.f32.mrf.mxu1 }
 0x1b6   :  { %v387_v47 = vadd.f32 %v386_v46, %v183_v39  ;;  %v391_v48 = vmax.f32 %v385_v44, 0.0 }
 0x1b8   :  { %v392_v50 = vmax.f32 %v387_v47, 0.0  ;;  %v393_v53 = vpack.c.bf16 %v391_v48, %v389_v51 }
 0x1ba   :  { %v394_v52 = vpack.c.bf16 %v392_v50, %v390_v49 }
 0x1bc   :  { %631 = vmatprep.mubr.bf16.mxu0 %v394_v52 }
 0x1bd   :  { %632 = vmatmul.mubr.bf16.vlgmr.msra.gmra.mxu0 %v393_v53 }
 0x27d   :  { %v633_v61 = vpop.f32.mrf.mxu0 }
 0x27e   :  { %v634_v6 = vadd.f32 %v633_v61, %v432_v63 }
 0x27f   :  { %v635_v0 = vpop.f32.mrf.mxu0 }
 0x280   :  { %v636_v4 = vadd.f32 %v635_v0, %v436_v62  ;;  %v642_v12 = vmax.f32 %v634_v6, 0.0 }
 0x281   :  { %v637_v1 = vpop.f32.mrf.mxu0 }
 0x282   :  { %v638_v5 = vadd.f32 %v637_v1, %v432_v63  ;;  %v643_v10 = vmax.f32 %v636_v4, 0.0 }
 0x283   :  { %v639_v7 = vpop.f32.mrf.mxu0 }
 0x284   :  { %v640_v8 = vadd.f32 %v639_v7, %v436_v62  ;;  %v644_v9 = vmax.f32 %v638_v5, 0.0 }
 0x286   :  { %v645_v11 = vmax.f32 %v640_v8, 0.0  ;;  %v646_v14 = vpack.c.bf16 %v644_v9, %v642_v12 }
 0x288   :  { %v647_v13 = vpack.c.bf16 %v645_v11, %v643_v10 }
 0x28a   :  { %815 = vmatprep.mubr.bf16.mxu1 %v647_v13 }
 0x28b   :  { %816 = vmatmul.mubr.bf16.vlgmr.msra.gmra.mxu1 %v646_v14 }
 0x34b   :  { %v945_v15 = vpop.f32.mrf.mxu1 }
 0x34d   :  { %v946_v3 = vpop.f32.mrf.mxu1 }
 0x34e   :  { %v947_v16 = vadd.f32 %v946_v3, %v945_v15 }
 0x34f   :  { %v948_v17 = vpop.f32.mrf.mxu1 }
 0x350   :  { %v818_v18 = vadd.f32 %v947_v16, %v912_v2 }
 0x351   :  { %v949_v19 = vpop.f32.mrf.mxu1 }
 0x352   :  { %825 = vst.msk [vmem:[#allocation7] sm:$0xff] %vm824_vm1, %v818_v18  ;;  %v950_v20 = vadd.f32 %v949_v19, %v948_v17 }
 0x354   :  { %v821_v21 = vadd.f32 %v950_v20, %v912_v2 }
 0x356   :  { %826 = vst.msk [vmem:[#allocation7 + $0x8] sm:$0xff] %vm824_vm1, %v821_v21 }
 0x357   :  { %831 = vsyncadd [#allocation4], 224  ;;  %s1145_s14 = smov [#allocation7]  }
 0x358   :  { %s832_s15 = sshll.u32 %s1145_s14, 4  ;;  %s833_s15 = int_to_ptr.vmem [resolvable:$true] %s832_s15 }
 0x359   :  { %s1114_s16 = scalar_lea.vmem %s833_s15, 32  ;;  %s1118_s17 = scalar_lea.vmem %s833_s15, 256 }
 0x35a   :  { %p1115_p10 = scmp.ne.s32.totalorder %s833_s15, %s1114_s16  ;;  %p1119_p11 = scmp.lt.s32.totalorder %s833_s15, %s833_s15 }
 0x35b   :  { %p1120_p12 = scmp.lt.s32.totalorder %s1118_s17, %s1114_s16 }
 0x35d   :  { %p1121_p13 = por %p1120_p12, %p1119_p11 }
 0x35f   :  { %p1122_p0 = pnand %p1121_p13, %p1115_p10 }
 0x361   :  { %1125 = shalt.err (!%p1122_p0)
}
 0x362   :  { %s1146_s8 = smov 32   ;;  %s1147_s18 = smov 2  }
 0x363   :  { %838 = dma.vmem_to_hbm [thread:$0]  %s833_s15, 32, %s1298_s9, [#allocation4], %s1146_s8, %s1146_s8, %s1147_s18  }
 0x364   :  { %1138 = dma.done.wait [#allocation4], 256  }
 0x365   :  { %1139 = vsyncadd [#allocation4], 4294967040 }
 0x366   :  { %842 = vsyncpa [#allocation3], 1 }
 0x367   :  { %843 = vsyncpa [#allocation6], 1 }
 0x368   :  { %844 = vsyncpa [#allocation4], 1 }

</bundles_post_ra>
